<compile_context>
chip_gen: v7x
topology: tpu7x:2x2x1
jax: 0.10.0
libtpu: 0.0.40
codegen_flags: <defaults>
</compile_context>

<pallas_src>
import math

import jax
import jax.numpy as jnp
from jax import lax
from jax.experimental import pallas as pl
from jax.experimental.pallas import tpu as pltpu


def _round_up(a: int, m: int) -> int:
    return ((a + m - 1) // m) * m


# ----------------------------------------------------------------------------
# Pallas kernel: per-row standard-normal log-density
#   logp[b] = -0.5 * sum_d x[b, d]^2  -  0.5 * D * log(2*pi)
# ----------------------------------------------------------------------------
def _make_logprob_kernel(tb: int, td: int, d_true: int, n_k: int):
    """Kernel for (tb, td) input tiles; d_true is the un-padded latent size."""
    n_chunks_full = td // 128
    rem = d_true - (n_k - 1) * td              # valid columns in last k tile
    n_chunks_tail = _round_up(rem, 128) // 128
    tail_is_full = (rem == td)                 # D divisible by TD -> no mask
    log_2pi = math.log(2.0 * math.pi)

    def _accumulate(x_ref, acc_ref, k, n_chunks, masked):
        # Register-resident accumulation: one VMEM read of acc, one write.
        def chunk_sq(c, acc):
            off = pl.multiple_of(c * 128, 128)
            chunk = x_ref[:, pl.ds(off, 128)].astype(jnp.float32)
            if masked:
                col = (k * td + off
                       + lax.broadcasted_iota(jnp.int32, (tb, 128), 1))
                chunk = jnp.where(col < d_true, chunk, 0.0)
            return acc + chunk * chunk

        acc = acc_ref[...]
        if n_chunks <= 8:
            for c in range(n_chunks):          # short tile: static unroll
                acc = chunk_sq(c, acc)
        else:                                  # long tile: bounded live ranges
            acc = lax.fori_loop(0, n_chunks, chunk_sq, acc, unroll=4)
        acc_ref[...] = acc

    def kernel(x_ref, o_ref, acc_ref):
        k = pl.program_id(1)

        @pl.when(k == 0)
        def _():
            acc_ref[...] = jnp.zeros_like(acc_ref)

        if tail_is_full:
            _accumulate(x_ref, acc_ref, k, n_chunks_full, masked=False)
        else:
            @pl.when(k < n_k - 1)
            def _():
                _accumulate(x_ref, acc_ref, k, n_chunks_full, masked=False)

            @pl.when(k == n_k - 1)
            def _():
                _accumulate(x_ref, acc_ref, k, n_chunks_tail, masked=True)

        @pl.when(k == n_k - 1)
        def _():
            # Single cross-lane (XLU) reduce + constant, once per B-tile.
            total = jnp.sum(acc_ref[...], axis=-1, keepdims=True)   # (tb, 1)
            o_ref[...] = -0.5 * total - 0.5 * d_true * log_2pi

    return kernel


_TARGET_TILE_BYTES = 8 * 1024 * 1024   # per input buffer (double-buffered)


def std_normal_logprob(x_flat: jax.Array, *, tb=None, td=None) -> jax.Array:
    """x_flat: (B, D) -> (B, 1) float32 log-probabilities under N(0, I)."""
    B, D = x_flat.shape
    itemsize = jnp.dtype(x_flat.dtype).itemsize

    if tb is None:
        tb = min(128, _round_up(B, 8))
        # Megacore: give v7x's second TensorCore a batch tile whenever B > 8.
        if B > 8 and pl.cdiv(B, tb) < 2:
            tb = max(8, _round_up(pl.cdiv(B, 2), 8))
    if td is None:
        td_cap = max(128, (_TARGET_TILE_BYTES // (tb * itemsize)) // 128 * 128)
        td = min(_round_up(D, 128), td_cap)

    grid = (pl.cdiv(B, tb), pl.cdiv(D, td))
    b_out = grid[0] * tb
    tile_bytes = tb * td * itemsize
    vmem_limit = max(32 * 1024 * 1024, 2 * tile_bytes + 2 * 1024 * 1024)

    out = pl.pallas_call(
        _make_logprob_kernel(tb, td, D, grid[1]),
        out_shape=jax.ShapeDtypeStruct((b_out, 1), jnp.float32),
        grid_spec=pltpu.PrefetchScalarGridSpec(
            num_scalar_prefetch=0,
            grid=grid,
            in_specs=[pl.BlockSpec((tb, td), lambda i, k: (i, k))],
            out_specs=pl.BlockSpec((tb, 1), lambda i, k: (i, 0)),
            scratch_shapes=[pltpu.VMEM((tb, 128), jnp.float32)],
        ),
        compiler_params=pltpu.CompilerParams(
            dimension_semantics=("parallel", "arbitrary"),
            vmem_limit_bytes=vmem_limit,
        ),
        cost_estimate=pl.CostEstimate(
            flops=2 * B * D,
            transcendentals=0,
            bytes_accessed=B * D * itemsize + B * 4,
        ),
    )(x_flat)

    return out[:B]


# ----------------------------------------------------------------------------
# Python-side module mirroring the reference class structure
# ----------------------------------------------------------------------------
class Prior:
    """JAX/Pallas port of lib.model.prior.Prior (+ ImageSizeMixin glue)."""

    def __init__(self, shape_gen, image_size_x: int, image_size_y: int):
        self.shape_gen = shape_gen
        # ImageSizeMixin normally injects these; set them directly here.
        self.image_size_x = image_size_x
        self.image_size_y = image_size_y

    @property
    def latent_size(self):
        return self.shape_gen(self.image_size_x, self.image_size_y)

    def forward(self, x: jax.Array) -> jax.Array:
        # x: (B, C, H, W) NCHW.  bf16 latents are streamed as-is (half the HBM
        # bytes on a bandwidth-bound kernel); accumulation is always f32.
        B = x.shape[0]
        return std_normal_logprob(x.reshape(B, -1))

    def sample(self, batch_size: int, *, key: jax.Array) -> jax.Array:
        # Standard-normal sampling of the latent (glue, not a hot path).
        shape = (batch_size,) + tuple(self.latent_size)
        return jax.random.normal(key, shape, dtype=jnp.float32)

    __call__ = forward


# ----------------------------------------------------------------------------
# Demo / smoke test
# ----------------------------------------------------------------------------
if __name__ == "__main__":
    key = jax.random.PRNGKey(0)

    # Small shapes: batch=2, channels=4, spatial 16x16  ->  D = 4*16*16 = 1024
    B, C, H, W = 2, 4, 16, 16
    shape_gen = lambda sx, sy: (C, sy, sx)          # latent shape generator
    prior = Prior(shape_gen, image_size_x=W, image_size_y=H)
    assert prior.latent_size == (C, H, W)

    x = jax.random.normal(key, (B, C, H, W), dtype=jnp.float32)
    logp = jax.block_until_ready(prior(x))

    x_flat = x.reshape(B, -1)
    ref = (-0.5 * jnp.sum(x_flat * x_flat, axis=-1, keepdims=True)
           - 0.5 * x_flat.shape[-1] * math.log(2.0 * math.pi))
    assert logp.shape == (B, 1)
    assert jnp.allclose(logp, ref, rtol=1e-5, atol=1e-4), (logp, ref)

    # Ragged D (masked tail chunk) + ragged B (partial batch tile), no padding.
    xb = jax.random.normal(jax.random.PRNGKey(2), (3, 130), jnp.float32)
    lp = jax.block_until_ready(std_normal_logprob(xb))
    rf = (-0.5 * jnp.sum(xb * xb, axis=-1, keepdims=True)
          - 0.5 * 130 * math.log(2.0 * math.pi))
    assert lp.shape == (3, 1)
    assert jnp.allclose(lp, rf, rtol=1e-5, atol=1e-4), (lp, rf)

    # Forced small tiles: exercises multi-step k accumulation, masked tail
    # D-tile, and a ragged final batch tile.
    xc = jax.random.normal(jax.random.PRNGKey(3), (10, 700), jnp.float32)
    lp2 = jax.block_until_ready(std_normal_logprob(xc, tb=8, td=256))
    rf2 = (-0.5 * jnp.sum(xc * xc, axis=-1, keepdims=True)
           - 0.5 * 700 * math.log(2.0 * math.pi))
    assert jnp.allclose(lp2, rf2, rtol=1e-5, atol=1e-4), (lp2, rf2)

    # bf16 latents: half the HBM bytes; f32 accumulation in-kernel.
    xd = jax.random.normal(jax.random.PRNGKey(4), (4, 1024), jnp.bfloat16)
    lp3 = jax.block_until_ready(std_normal_logprob(xd))
    rf3 = (-0.5 * jnp.sum(xd.astype(jnp.float32) ** 2, axis=-1, keepdims=True)
           - 0.5 * 1024 * math.log(2.0 * math.pi))
    assert jnp.allclose(lp3, rf3, rtol=1e-4, atol=1e-2), (lp3, rf3)

    # Exercise sample() once as well (plain-JAX glue).
    z = jax.block_until_ready(prior.sample(B, key=jax.random.PRNGKey(1)))
    assert z.shape == (B, C, H, W)

    print("KERNEL_OK")
</pallas_src>

<mosaic_0001>
module attributes {stable_mosaic.version = 11 : i64} {
  func.func @kernel(%arg0: i32, %arg1: i32, %arg2: memref<8x1024xf32, #tpu.memory_space<vmem>>, %arg3: memref<8x1xf32, #tpu.memory_space<vmem>>, %arg4: memref<8x128xf32, #tpu.memory_space<vmem>>) attributes {dimension_semantics = [#tpu.dimension_semantics<parallel>, #tpu.dimension_semantics<arbitrary>], iteration_bounds = array<i64: 1, 1>, scalar_prefetch = 0 : i64, scratch_operands = 1 : i64, tpu.core_type = #tpu.core_type<tc>, window_params = [{transform_indices = @transform_0, window_bounds = array<i64: 8, 1024>}, {transform_indices = @transform_1, window_bounds = array<i64: 8, 1>}]} {
    %c0_i32 = arith.constant 0 : i32
    %0 = arith.cmpi eq, %arg1, %c0_i32 : i32
    %1 = arith.extui %0 : i1 to i32
    %c0_i32_0 = arith.constant 0 : i32
    %2 = arith.cmpi ne, %1, %c0_i32_0 : i32
    scf.if %2 {
      %cst = arith.constant 0.000000e+00 : f32
      %48 = vector.broadcast %cst : f32 to vector<8x128xf32>
      %c0_15 = arith.constant 0 : index
      %c0_16 = arith.constant 0 : index
      %49 = vector.load %arg4[%c0_15, %c0_16] : memref<8x128xf32, #tpu.memory_space<vmem>>, vector<8x128xf32>
      tpu.vector_store %arg4[%c0_15, %c0_16], %48 {strides = array<i32>} : memref<8x128xf32, #tpu.memory_space<vmem>>, vector<8x128xf32>,
    } else {
    }
    %c0 = arith.constant 0 : index
    %c0_1 = arith.constant 0 : index
    %3 = vector.load %arg4[%c0, %c0_1] : memref<8x128xf32, #tpu.memory_space<vmem>>, vector<8x128xf32>
    %c0_i32_2 = arith.constant 0 : i32
    %4 = tpu.assume_multiple %c0_i32_2, 128 : i32
    %c0_3 = arith.constant 0 : index
    %5 = arith.index_cast %4 : i32 to index
    %6 = vector.load %arg2[%c0_3, %5] : memref<8x1024xf32, #tpu.memory_space<vmem>>, vector<8x128xf32>
    %7 = arith.mulf %6, %6 : vector<8x128xf32>
    %8 = arith.addf %3, %7 : vector<8x128xf32>
    %c128_i32 = arith.constant 128 : i32
    %9 = tpu.assume_multiple %c128_i32, 128 : i32
    %c0_4 = arith.constant 0 : index
    %10 = arith.index_cast %9 : i32 to index
    %11 = vector.load %arg2[%c0_4, %10] : memref<8x1024xf32, #tpu.memory_space<vmem>>, vector<8x128xf32>
    %12 = arith.mulf %11, %11 : vector<8x128xf32>
    %13 = arith.addf %8, %12 : vector<8x128xf32>
    %c256_i32 = arith.constant 256 : i32
    %14 = tpu.assume_multiple %c256_i32, 128 : i32
    %c0_5 = arith.constant 0 : index
    %15 = arith.index_cast %14 : i32 to index
    %16 = vector.load %arg2[%c0_5, %15] : memref<8x1024xf32, #tpu.memory_space<vmem>>, vector<8x128xf32>
    %17 = arith.mulf %16, %16 : vector<8x128xf32>
    %18 = arith.addf %13, %17 : vector<8x128xf32>
    %c384_i32 = arith.constant 384 : i32
    %19 = tpu.assume_multiple %c384_i32, 128 : i32
    %c0_6 = arith.constant 0 : index
    %20 = arith.index_cast %19 : i32 to index
    %21 = vector.load %arg2[%c0_6, %20] : memref<8x1024xf32, #tpu.memory_space<vmem>>, vector<8x128xf32>
    %22 = arith.mulf %21, %21 : vector<8x128xf32>
    %23 = arith.addf %18, %22 : vector<8x128xf32>
    %c512_i32 = arith.constant 512 : i32
    %24 = tpu.assume_multiple %c512_i32, 128 : i32
    %c0_7 = arith.constant 0 : index
    %25 = arith.index_cast %24 : i32 to index
    %26 = vector.load %arg2[%c0_7, %25] : memref<8x1024xf32, #tpu.memory_space<vmem>>, vector<8x128xf32>
    %27 = arith.mulf %26, %26 : vector<8x128xf32>
    %28 = arith.addf %23, %27 : vector<8x128xf32>
    %c640_i32 = arith.constant 640 : i32
    %29 = tpu.assume_multiple %c640_i32, 128 : i32
    %c0_8 = arith.constant 0 : index
    %30 = arith.index_cast %29 : i32 to index
    %31 = vector.load %arg2[%c0_8, %30] : memref<8x1024xf32, #tpu.memory_space<vmem>>, vector<8x128xf32>
    %32 = arith.mulf %31, %31 : vector<8x128xf32>
    %33 = arith.addf %28, %32 : vector<8x128xf32>
    %c768_i32 = arith.constant 768 : i32
    %34 = tpu.assume_multiple %c768_i32, 128 : i32
    %c0_9 = arith.constant 0 : index
    %35 = arith.index_cast %34 : i32 to index
    %36 = vector.load %arg2[%c0_9, %35] : memref<8x1024xf32, #tpu.memory_space<vmem>>, vector<8x128xf32>
    %37 = arith.mulf %36, %36 : vector<8x128xf32>
    %38 = arith.addf %33, %37 : vector<8x128xf32>
    %c896_i32 = arith.constant 896 : i32
    %39 = tpu.assume_multiple %c896_i32, 128 : i32
    %c0_10 = arith.constant 0 : index
    %40 = arith.index_cast %39 : i32 to index
    %41 = vector.load %arg2[%c0_10, %40] : memref<8x1024xf32, #tpu.memory_space<vmem>>, vector<8x128xf32>
    %42 = arith.mulf %41, %41 : vector<8x128xf32>
    %43 = arith.addf %38, %42 : vector<8x128xf32>
    %c0_11 = arith.constant 0 : index
    %c0_12 = arith.constant 0 : index
    %44 = vector.load %arg4[%c0_11, %c0_12] : memref<8x128xf32, #tpu.memory_space<vmem>>, vector<8x128xf32>
    tpu.vector_store %arg4[%c0_11, %c0_12], %43 {strides = array<i32>} : memref<8x128xf32, #tpu.memory_space<vmem>>, vector<8x128xf32>,
    %c0_i32_13 = arith.constant 0 : i32
    %45 = arith.cmpi eq, %arg1, %c0_i32_13 : i32
    %46 = arith.extui %45 : i1 to i32
    %c0_i32_14 = arith.constant 0 : i32
    %47 = arith.cmpi ne, %46, %c0_i32_14 : i32
    scf.if %47 {
      %c0_15 = arith.constant 0 : index
      %c0_16 = arith.constant 0 : index
      %48 = vector.load %arg4[%c0_15, %c0_16] : memref<8x128xf32, #tpu.memory_space<vmem>>, vector<8x128xf32>
      %cst = arith.constant dense<0.000000e+00> : vector<8xf32>
      %49 = vector.multi_reduction <add>, %48, %cst [1] : vector<8x128xf32> to vector<8xf32>
      %50 = vector.shape_cast %49 : vector<8xf32> to vector<8x1xf32>
      %cst_17 = arith.constant -5.000000e-01 : f32
      %51 = vector.broadcast %cst_17 : f32 to vector<8x1xf32>
      %52 = arith.mulf %51, %50 : vector<8x1xf32>
      %cst_18 = arith.constant 940.993041 : f32
      %53 = vector.broadcast %cst_18 : f32 to vector<8x1xf32>
      %54 = arith.subf %52, %53 : vector<8x1xf32>
      %c0_19 = arith.constant 0 : index
      %c0_20 = arith.constant 0 : index
      %55 = vector.load %arg3[%c0_19, %c0_20] : memref<8x1xf32, #tpu.memory_space<vmem>>, vector<8x1xf32>
      tpu.vector_store %arg3[%c0_19, %c0_20], %54 {strides = array<i32>} : memref<8x1xf32, #tpu.memory_space<vmem>>, vector<8x1xf32>,
    } else {
    }
    return
  }
  func.func @transform_0(%arg0: i32, %arg1: i32) -> (i32, i32) {
    %c0_i32 = arith.constant 0 : i32
    return %arg0, %arg1 : i32, i32
  }
  func.func @transform_1(%arg0: i32, %arg1: i32) -> (i32, i32) {
    %c0_i32 = arith.constant 0 : i32
    %c0_i32_0 = arith.constant 0 : i32
    return %arg0, %c0_i32 : i32, i32
  }
}

</mosaic_0001>

<bundles_post_ra>
// kernel: tpu_custom_call.1
= control target key start
LH: loop header
LB: loop body
LE: loop exit
PB: predicated region body
PF: predicated region fallthrough
CT: control target
= control target key end

     0   :  { %6 = vsyncpa [#allocation4], 0  ;;  %s375_s0 = inlined_call_operand.hbm [shape: f32[2,1024], index: 0, kind: input, shape index: {}]   ;;  %s376_s1 = inlined_call_operand.vmem [shape: f32[8,1], index: 1, kind: output, shape index: {}]  }
   0x1   :  { %11 = vsyncadd [#allocation4], 768  ;;  %s328_s6 = smov [#allocation3]   ;;  %s304_s10 = scalar_lea.hbm %s375_s0, 256 }
   0x2   :  { %s12_s7 = sshll.u32 %s328_s6, 4  ;;  %p305_p0 = scmp.ne.s32.totalorder %s375_s0, %s304_s10  ;;  %s13_s7 = int_to_ptr.vmem [resolvable:$true] %s12_s7 }
   0x3   :  { %p308_p1 = scmp.lt.u32.totalorder %s304_s10, %s375_s0 }
   0x5   :  { %p310_p2 = pnand %p308_p1, %p305_p0 }
   0x7   :  { %313 = shalt.err (!%p310_p2)
}
   0x8   :  { %s314_s15 = scalar_lea.vmem %s13_s7, 256  ;;  %s318_s16 = scalar_lea.vmem %s13_s7, 1024 }
   0x9   :  { %p315_p3 = scmp.ne.s32.totalorder %s13_s7, %s314_s15  ;;  %p319_p4 = scmp.lt.s32.totalorder %s13_s7, %s13_s7 }
   0xa   :  { %p320_p5 = scmp.lt.s32.totalorder %s318_s16, %s314_s15 }
   0xc   :  { %p321_p6 = por %p320_p5, %p319_p4 }
   0xe   :  { %p322_p7 = pnand %p321_p6, %p315_p3 }
  0x10   :  { %325 = shalt.err (!%p322_p7)
}
  0x11   :  { %s329_s17 = smov 256   ;;  %s330_s18 = smov 16  }
  0x12   :  { %18 = dma.hbm_to_vmem [thread:$0]  %s375_s0, 256, %s13_s7, [#allocation4], %s329_s17, %s329_s17, %s330_s18  }
  0x13   :  { %326 = dma.done.wait [#allocation4], 1024  }
  0x14   :  { %327 = vsyncadd [#allocation4], 4294966272  ;;  %v45_v0 = vlaneseq  ;;  %v331_v1 = vmov 1983009808   ;;  %v28_v5 = vld [vmem:[#allocation3] sm:$0x3] }
  0x15   :  { %v43_v2 = vunpack.c.l.s4 %v331_v1  ;;  %v29_v6 = vld [vmem:[#allocation3 + $0x10] sm:$0x3]  ;;  %v30_v7 = vld [vmem:[#allocation3 + $0x20] sm:$0x3]  ;;  %v32_v9 = vmul.f32 %v28_v5, %v28_v5  ;;  %v60_v13 = vld [vmem:[#allocation3 + $0x2] sm:$0x3] }
  0x16   :  { %v46_v4 = vshrl.u32 %v45_v0, 7  ;;  %v31_v8 = vld [vmem:[#allocation3 + $0x30] sm:$0x3]  ;;  %v33_v10 = vmul.f32 %v29_v6, %v29_v6  ;;  %v34_v11 = vmul.f32 %v30_v7, %v30_v7  ;;  %v61_v14 = vld [vmem:[#allocation3 + $0x12] sm:$0x3]  ;;  %v64_v18 = vmul.f32 %v60_v13, %v60_v13 }
  0x17   :  { %v44_v3 = vunpack.c.0.s8 %v43_v2  ;;  %v35_v15 = vmul.f32 %v31_v8, %v31_v8  ;;  %v62_v16 = vld [vmem:[#allocation3 + $0x22] sm:$0x3]  ;;  %v63_v17 = vld [vmem:[#allocation3 + $0x32] sm:$0x3]  ;;  %v65_v19 = vmul.f32 %v61_v14, %v61_v14  ;;  %v92_v20 = vld [vmem:[#allocation3 + $0x4] sm:$0x3] }
  0x18   :  { %v40_v21 = vcombine.low %v32_v9, %v33_v10  ;;  %v66_v22 = vmul.f32 %v62_v16, %v62_v16  ;;  %v67_v23 = vmul.f32 %v63_v17, %v63_v17  ;;  %v93_v24 = vld [vmem:[#allocation3 + $0x14] sm:$0x3]  ;;  %v94_v25 = vld [vmem:[#allocation3 + $0x24] sm:$0x3]  ;;  %v96_v27 = vmul.f32 %v92_v20, %v92_v20  ;;  %v124_v32 = vld [vmem:[#allocation3 + $0x6] sm:$0x3] }
  0x19   :  { %v354_v12 = vsub.s32 %v44_v3, %v46_v4  ;;  %v95_v26 = vld [vmem:[#allocation3 + $0x34] sm:$0x3]  ;;  %v41_v28 = vcombine.low %v34_v11, %v35_v15  ;;  %v72_v29 = vcombine.low %v64_v18, %v65_v19  ;;  %v97_v30 = vmul.f32 %v93_v24, %v93_v24  ;;  %v125_v33 = vld [vmem:[#allocation3 + $0x16] sm:$0x3]  ;;  %v126_v34 = vld [vmem:[#allocation3 + $0x26] sm:$0x3] }
  0x1a   :  { %v98_v31 = vmul.f32 %v94_v25, %v94_v25  ;;  %v73_v36 = vcombine.low %v66_v22, %v67_v23  ;;  %v99_v37 = vmul.f32 %v95_v26, %v95_v26  ;;  %v127_v38 = vld [vmem:[#allocation3 + $0x36] sm:$0x3]  ;;  %v128_v39 = vmul.f32 %v124_v32, %v124_v32  ;;  %v156_v40 = vld [vmem:[#allocation3 + $0x8] sm:$0x3]  ;;  %v157_v45 = vld [vmem:[#allocation3 + $0x18] sm:$0x3] }
  0x1b   :  { %v48_v35 = vrot.slane %v40_v21, %v354_v12  ;;  %v55_v41 = vrot.slane %v41_v28, %v354_v12  ;;  %v80_v42 = vrot.slane %v72_v29, %v354_v12  ;;  %v104_v43 = vcombine.low %v96_v27, %v97_v30  ;;  %v158_v50 = vld [vmem:[#allocation3 + $0x28] sm:$0x3]  ;;  %v159_v51 = vld [vmem:[#allocation3 + $0x38] sm:$0x3]  ;;  %v188_v52 = vld [vmem:[#allocation3 + $0xa] sm:$0x3] }
  0x1c   :  { %v129_v44 = vmul.f32 %v125_v33, %v125_v33  ;;  %v87_v46 = vrot.slane %v73_v36, %v354_v12  ;;  %v105_v47 = vcombine.low %v98_v31, %v99_v37  ;;  %v130_v48 = vmul.f32 %v126_v34, %v126_v34  ;;  %v189_v61 = vld [vmem:[#allocation3 + $0x1a] sm:$0x3]  ;;  %v190_v62 = vld [vmem:[#allocation3 + $0x2a] sm:$0x3]  ;;  %v220_v4 = vld [vmem:[#allocation3 + $0xc] sm:$0x3] }
  0x1d   :  { %v131_v49 = vmul.f32 %v127_v38, %v127_v38  ;;  %v56_v53 = vcombine.low %v48_v35, %v55_v41  ;;  %v112_v54 = vrot.slane %v104_v43, %v354_v12  ;;  %v160_v56 = vmul.f32 %v156_v40, %v156_v40  ;;  %v191_v63 = vld [vmem:[#allocation3 + $0x3a] sm:$0x3]  ;;  %v221_v9 = vld [vmem:[#allocation3 + $0x1c] sm:$0x3]  ;;  %v222_v15 = vld [vmem:[#allocation3 + $0x2c] sm:$0x3] }
  0x1e   :  { %v136_v55 = vcombine.low %v128_v39, %v129_v44  ;;  %v88_v57 = vcombine.low %v80_v42, %v87_v46  ;;  %v119_v58 = vrot.slane %v105_v47, %v354_v12  ;;  %v161_v60 = vmul.f32 %v157_v45, %v157_v45  ;;  %v223_v16 = vld [vmem:[#allocation3 + $0x3c] sm:$0x3]  ;;  %v252_v17 = vld [vmem:[#allocation3 + $0xe] sm:$0x3]  ;;  %v253_v26 = vld [vmem:[#allocation3 + $0x1e] sm:$0x3] }
  0x1f   :  { %v137_v59 = vcombine.low %v130_v48, %v131_v49  ;;  %v162_v1 = vmul.f32 %v158_v50, %v158_v50  ;;  %v163_v2 = vmul.f32 %v159_v51, %v159_v51  ;;  %v192_v3 = vmul.f32 %v188_v52, %v188_v52  ;;  %v254_v27 = vld [vmem:[#allocation3 + $0x2e] sm:$0x3]  ;;  %v255_v28 = vld [vmem:[#allocation3 + $0x3e] sm:$0x3] }
  0x20   :  { %v144_v0 = vrot.slane %v136_v55, %v354_v12  ;;  %v90_v5 = vadd.f32 %v88_v57, %v56_v53  ;;  %v120_v6 = vcombine.low %v112_v54, %v119_v58  ;;  %v168_v8 = vcombine.low %v160_v56, %v161_v60 }
  0x21   :  { %v151_v7 = vrot.slane %v137_v59, %v354_v12  ;;  %v169_v10 = vcombine.low %v162_v1, %v163_v2  ;;  %v193_v11 = vmul.f32 %v189_v61, %v189_v61  ;;  %v194_v13 = vmul.f32 %v190_v62, %v190_v62 }
  0x22   :  { %v195_v14 = vmul.f32 %v191_v63, %v191_v63  ;;  %v122_v18 = vadd.f32 %v120_v6, %v90_v5  ;;  %v176_v20 = vrot.slane %v168_v8, %v354_v12  ;;  %v224_v21 = vmul.f32 %v220_v4, %v220_v4 }
  0x23   :  { %v152_v19 = vcombine.low %v144_v0, %v151_v7  ;;  %v183_v22 = vrot.slane %v169_v10, %v354_v12  ;;  %v200_v23 = vcombine.low %v192_v3, %v193_v11  ;;  %v225_v25 = vmul.f32 %v221_v9, %v221_v9 }
  0x24   :  { %v201_v24 = vcombine.low %v194_v13, %v195_v14  ;;  %v226_v30 = vmul.f32 %v222_v15, %v222_v15  ;;  %v227_v31 = vmul.f32 %v223_v16, %v223_v16  ;;  %v256_v32 = vmul.f32 %v252_v17, %v252_v17 }
  0x25   :  { %v154_v29 = vadd.f32 %v152_v19, %v122_v18  ;;  %v184_v33 = vcombine.low %v176_v20, %v183_v22  ;;  %v208_v34 = vrot.slane %v200_v23, %v354_v12  ;;  %v232_v36 = vcombine.low %v224_v21, %v225_v25 }
  0x26   :  { %v215_v35 = vrot.slane %v201_v24, %v354_v12  ;;  %v233_v37 = vcombine.low %v226_v30, %v227_v31  ;;  %v257_v38 = vmul.f32 %v253_v26, %v253_v26  ;;  %v258_v39 = vmul.f32 %v254_v27, %v254_v27 }
  0x27   :  { %v259_v40 = vmul.f32 %v255_v28, %v255_v28  ;;  %v186_v41 = vadd.f32 %v184_v33, %v154_v29  ;;  %v240_v43 = vrot.slane %v232_v36, %v354_v12  ;;  %vm292_vm0 = vcmask 7168  }
  0x28   :  { %v216_v42 = vcombine.low %v208_v34, %v215_v35  ;;  %v247_v44 = vrot.slane %v233_v37, %v354_v12  ;;  %v264_v45 = vcombine.low %v256_v32, %v257_v38 }
  0x29   :  { %v265_v46 = vcombine.low %v258_v39, %v259_v40 }
  0x2a   :  { %v218_v47 = vadd.f32 %v216_v42, %v186_v41  ;;  %v248_v48 = vcombine.low %v240_v43, %v247_v44  ;;  %v272_v49 = vrot.slane %v264_v45, %v354_v12 }
  0x2b   :  { %v279_v50 = vrot.slane %v265_v46, %v354_v12 }
  0x2c   :  { %v250_v51 = vadd.f32 %v248_v48, %v218_v47 }
  0x2d   :  { %v280_v52 = vcombine.low %v272_v49, %v279_v50 }
  0x2f   :  { %v282_v53 = vadd.f32 %v280_v52, %v250_v51 }
  0x31   :  { %288 = vadd.xlane.f32.xlu0 %v282_v53 }
  0xbe   :  { %v289_v54 = vpop.xlane.xlu0 %288 }
  0xbf   :  { %v290_v55 = vmul.f32 -0.5, %v289_v54 }
  0xc1   :  { %v299_v56 = vadd.f32 -940.99304, %v290_v55 }
  0xc3   :  { %293 = vst.msk [vmem:[%s376_s1] sm:$0xff] %vm292_vm0, %v299_v56 }
  0xc4   :  { %298 = vsyncpa [#allocation4], 1 }

</bundles_post_ra>
